<compile_context>
chip_gen: v7x
topology: tpu7x:2x2x1
jax: 0.10.0
libtpu: 0.0.40
codegen_flags: <defaults>
</compile_context>

<pallas_src>
import jax
import jax.numpy as jnp
from jax.experimental import pallas as pl
from jax.experimental.pallas import tpu as pltpu


def _mtl_loss_kernel(losses_ref, log_sigma_ref, total_ref, prec_ref):
    # losses_ref / log_sigma_ref: (1, T) f32 in VMEM (T = num_tasks, tiny).
    losses = losses_ref[...]
    log_sigma = log_sigma_ref[...]

    # precisions = 0.5 * exp(-2 * log_sigma)   (exp runs on the EUP slot)
    precisions = 0.5 * jnp.exp(-2.0 * log_sigma)
    prec_ref[...] = precisions  # residual for the custom VJP (no exp in bwd)

    # Per-task contribution reduced over the true T (XLU lane reduce),
    # scalar result written straight to SMEM.
    total_ref[0, 0] = jnp.sum(precisions * losses + log_sigma)


def _mtl_loss_pallas(loss_terms, log_sigma):
    """loss_terms, log_sigma: (T,) f32.  Returns (scalar total, (1,T) precisions)."""
    num_tasks = loss_terms.shape[0]
    assert log_sigma.shape[0] == num_tasks

    lt = loss_terms.astype(jnp.float32).reshape(1, num_tasks)
    ls = log_sigma.astype(jnp.float32).reshape(1, num_tasks)

    total, precisions = pl.pallas_call(
        _mtl_loss_kernel,
        out_shape=(
            jax.ShapeDtypeStruct((1, 1), jnp.float32),          # total loss
            jax.ShapeDtypeStruct((1, num_tasks), jnp.float32),  # precisions
        ),
        in_specs=[
            pl.BlockSpec(memory_space=pltpu.MemorySpace.VMEM),
            pl.BlockSpec(memory_space=pltpu.MemorySpace.VMEM),
        ],
        out_specs=(
            pl.BlockSpec(memory_space=pltpu.MemorySpace.SMEM),
            pl.BlockSpec(memory_space=pltpu.MemorySpace.VMEM),
        ),
        cost_estimate=pl.CostEstimate(
            flops=4 * num_tasks,           # mul/neg/fma/add over one lane row
            transcendentals=num_tasks,     # one exp per task
            bytes_accessed=(3 * num_tasks + 1) * 4,
        ),
    )(lt, ls)
    return total[0, 0], precisions


# --- Differentiable wrapper (log_sigma is a trainable parameter in PyTorch) ---

@jax.custom_vjp
def mtl_loss(loss_terms, log_sigma):
    total, _ = _mtl_loss_pallas(loss_terms, log_sigma)
    return total


def _mtl_loss_fwd(loss_terms, log_sigma):
    total, precisions = _mtl_loss_pallas(loss_terms, log_sigma)
    # Save precisions from the kernel instead of log_sigma -> no exp in bwd.
    return total, (loss_terms.astype(jnp.float32), precisions)


def _mtl_loss_bwd(residuals, g):
    loss_terms, precisions = residuals
    p = precisions[0]                                   # (T,)
    d_loss_terms = g * p                                # d total / d loss_t
    d_log_sigma = g * (1.0 - 2.0 * p * loss_terms)      # d total / d log_sigma_t
    return d_loss_terms, d_log_sigma


mtl_loss.defvjp(_mtl_loss_fwd, _mtl_loss_bwd)


if __name__ == "__main__":
    num_tasks = 2
    key = jax.random.PRNGKey(0)

    # Same deterministic parameter init as the PyTorch module: zeros.
    log_sigma = jnp.zeros((num_tasks,), jnp.float32)

    # Example scalar task losses (e.g. outputs of two task-specific criteria).
    loss_terms = jax.random.uniform(key, (num_tasks,), jnp.float32, 0.1, 2.0)

    total = mtl_loss(loss_terms, log_sigma)
    total = jax.block_until_ready(total)

    # Pure-JAX forward reference.
    precisions_ref = 0.5 * jnp.exp(-2.0 * log_sigma)
    ref = jnp.sum(precisions_ref * loss_terms + log_sigma)
    assert jnp.allclose(total, ref, rtol=1e-6, atol=1e-6), (total, ref)

    # Gradient check (custom_vjp) against plain-JAX autodiff of the reference.
    def ref_fn(lt, ls):
        p = 0.5 * jnp.exp(-2.0 * ls)
        return jnp.sum(p * lt + ls)

    g_kernel = jax.grad(mtl_loss, argnums=(0, 1))(loss_terms, log_sigma)
    g_ref = jax.grad(ref_fn, argnums=(0, 1))(loss_terms, log_sigma)
    for gk, gr in zip(g_kernel, g_ref):
        assert jnp.allclose(gk, gr, rtol=1e-6, atol=1e-6), (gk, gr)

    print("KERNEL_OK")
</pallas_src>

<mosaic_0001>
module attributes {stable_mosaic.version = 11 : i64} {
  func.func @_mtl_loss_kernel(%arg0: memref<1x2xf32, #tpu.memory_space<vmem>>, %arg1: memref<1x2xf32, #tpu.memory_space<vmem>>, %arg2: memref<1x1xf32, #tpu.memory_space<smem>>, %arg3: memref<1x2xf32, #tpu.memory_space<vmem>>) attributes {dimension_semantics = [], scalar_prefetch = 0 : i64, scratch_operands = 0 : i64, tpu.core_type = #tpu.core_type<tc>} {
    %c0 = arith.constant 0 : index
    %c0_0 = arith.constant 0 : index
    %0 = vector.load %arg0[%c0, %c0_0] : memref<1x2xf32, #tpu.memory_space<vmem>>, vector<1x2xf32>
    %c0_1 = arith.constant 0 : index
    %c0_2 = arith.constant 0 : index
    %1 = vector.load %arg1[%c0_1, %c0_2] : memref<1x2xf32, #tpu.memory_space<vmem>>, vector<1x2xf32>
    %cst = arith.constant -2.000000e+00 : f32
    %2 = vector.broadcast %cst : f32 to vector<1x2xf32>
    %3 = arith.mulf %2, %1 : vector<1x2xf32>
    %4 = math.exp %3 : vector<1x2xf32>
    %cst_3 = arith.constant 5.000000e-01 : f32
    %5 = vector.broadcast %cst_3 : f32 to vector<1x2xf32>
    %6 = arith.mulf %5, %4 : vector<1x2xf32>
    %c0_4 = arith.constant 0 : index
    %c0_5 = arith.constant 0 : index
    %7 = vector.load %arg3[%c0_4, %c0_5] : memref<1x2xf32, #tpu.memory_space<vmem>>, vector<1x2xf32>
    tpu.vector_store %arg3[%c0_4, %c0_5], %6 {strides = array<i32>} : memref<1x2xf32, #tpu.memory_space<vmem>>, vector<1x2xf32>,
    %8 = arith.mulf %6, %0 : vector<1x2xf32>
    %9 = arith.addf %8, %1 : vector<1x2xf32>
    %10 = vector.shape_cast %9 : vector<1x2xf32> to vector<1x1x2xf32>
    %cst_6 = arith.constant dense<0.000000e+00> : vector<1xf32>
    %11 = vector.multi_reduction <add>, %10, %cst_6 [1, 2] : vector<1x1x2xf32> to vector<1xf32>
    %12 = vector.shape_cast %11 : vector<1xf32> to vector<1x1x1xf32>
    %13 = vector.extract %12[0, 0, 0] : f32 from vector<1x1x1xf32>
    %c0_7 = arith.constant 0 : index
    %c0_8 = arith.constant 0 : index
    %14 = memref.load %arg2[%c0_7, %c0_8] : memref<1x1xf32, #tpu.memory_space<smem>>
    memref.store %13, %arg2[%c0_7, %c0_8] : memref<1x1xf32, #tpu.memory_space<smem>>
    return
  }
}

</mosaic_0001>

<bundles_post_ra>
// kernel: tpu_custom_call.1
= control target key start
LH: loop header
LB: loop body
LE: loop exit
PB: predicated region body
PF: predicated region fallthrough
CT: control target
= control target key end

     0   :  { %9 = vsyncpa [#allocation3], 0  ;;  %s206_s0 = inlined_call_operand.hbm [shape: f32[1,2], index: 0, kind: input, shape index: {}]   ;;  %s207_s1 = inlined_call_operand.vmem [shape: f32[1,2], index: 1, kind: input, shape index: {}]   ;;  %s208_s2 = inlined_call_operand.hbm [shape: f32[1,1], index: 2, kind: output, shape index: {0}]   ;;  %s209_s3 = inlined_call_operand.hbm [shape: f32[1,2], index: 3, kind: output, shape index: {1}]  }
   0x1   :  { %10 = vsyncpa [#allocation5], 0 }
   0x2   :  { %11 = vsyncpa [#allocation4], 0  ;;  %s144_s12 = smov [#allocation2]   ;;  %s84_s16 = scalar_lea.hbm %s206_s0, 16 }
   0x3   :  { %s18_s13 = sshll.u32 %s144_s12, 4  ;;  %p85_p0 = scmp.ne.s32.totalorder %s206_s0, %s84_s16  ;;  %s19_s13 = int_to_ptr.vmem [resolvable:$true] %s18_s13 }
   0x4   :  { %p88_p1 = scmp.lt.u32.totalorder %s84_s16, %s206_s0 }
   0x6   :  { %p90_p2 = pnand %p88_p1, %p85_p0 }
   0x8   :  { %93 = shalt.err (!%p90_p2)
}
   0x9   :  { %s94_s21 = scalar_lea.vmem %s19_s13, 16  ;;  %s98_s22 = scalar_lea.vmem %s19_s13, 32 }
   0xa   :  { %p95_p3 = scmp.ne.s32.totalorder %s19_s13, %s94_s21  ;;  %p99_p4 = scmp.lt.s32.totalorder %s19_s13, %s19_s13 }
   0xb   :  { %p100_p5 = scmp.lt.s32.totalorder %s98_s22, %s94_s21 }
   0xd   :  { %p101_p6 = por %p100_p5, %p99_p4 }
   0xf   :  { %p102_p7 = pnand %p101_p6, %p95_p3 }
  0x11   :  { %105 = shalt.err (!%p102_p7)
}
  0x12   :  { %21 = dma.hbm_to_vmem [thread:$0]  %s206_s0, 16, %s19_s13, [#allocation3]  }
  0x13   :  { %138 = dma.done.wait [#allocation3], 16  }
  0x14   :  { %139 = vsyncadd [#allocation3], 4294967280  ;;  %v28_v0 = vld [vmem:[%s207_s1] sm:$0x1]  ;;  %vm33_vm0 = vcmask 8192   ;;  %s145_s27 = smov [#allocation7]  }
  0x15   :  { %v29_v1 = vmul.f32 -2.0, %v28_v0  ;;  %v27_v4 = vld [vmem:[#allocation2] sm:$0x1]  ;;  %s63_s0 = sshll.u32 %s145_s27, 4  ;;  %s64_s0 = int_to_ptr.vmem [resolvable:$true] %s63_s0 }
  0x16   :  { %s106_s28 = scalar_lea.vmem %s64_s0, 16  ;;  %s110_s29 = scalar_lea.vmem %s64_s0, 32 }
  0x17   :  { %v30_v2 = vmul.f32 1.442695, %v29_v1  ;;  %p107_p8 = scmp.ne.s32.totalorder %s64_s0, %s106_s28  ;;  %p111_p9 = scmp.lt.s32.totalorder %s64_s0, %s64_s0 }
  0x18   :  { %p112_p10 = scmp.lt.s32.totalorder %s110_s29, %s106_s28 }
  0x19   :  { %82 = vpow2.f32 %v30_v2 }
  0x1a   :  { %p113_p11 = por %p112_p10, %p111_p9 }
  0x1c   :  { %p114_p12 = pnand %p113_p11, %p107_p8 }
  0x23   :  { %v83_v3 = vpop.eup %82 }
  0x24   :  { %v32_v5 = vmul.f32 0.5, %v83_v3 }
  0x26   :  { %v35_v6 = vmul.f32 %v32_v5, %v27_v4  ;;  %34 = vst.msk [vmem:[#allocation7] sm:$0x1] %vm33_vm0, %v32_v5 }
  0x28   :  { %v36_v7 = vadd.f32 %v35_v6, %v28_v0 }
  0x2a   :  { %v37_v8 = vsel %vm33_vm0, %v36_v7, 0.0 }
  0x2b   :  { %38 = vadd.xlane.f32.xlu0 %v37_v8 }
  0x2c   :  { %117 = shalt.err (!%p114_p12)
}
  0x2d   :  { %s118_s4 = scalar_lea.hbm %s209_s3, 16 }
  0x2e   :  { %p119_p13 = scmp.ne.s32.totalorder %s209_s3, %s118_s4  ;;  %p122_p0 = scmp.lt.u32.totalorder %s118_s4, %s209_s3 }
  0x30   :  { %p124_p1 = pnand %p122_p0, %p119_p13 }
  0x32   :  { %127 = shalt.err (!%p124_p1)
}
  0x33   :  { %66 = dma.vmem_to_hbm [thread:$0]  %s64_s0, 16, %s209_s3, [#allocation4]  }
  0x34   :  { %s128_s14 = scalar_lea.hbm %s208_s2, 16 }
  0x35   :  { %p129_p2 = scmp.ne.s32.totalorder %s208_s2, %s128_s14  ;;  %p132_p3 = scmp.lt.u32.totalorder %s128_s14, %s208_s2 }
  0x37   :  { %p134_p4 = pnand %p132_p3, %p129_p2 }
  0xb8   :  { %v39_v9 = vpop.xlane.xlu0 %38 }
  0xb9   :  { %v40_v10 = vrot.slane %v39_v9, 4 }
  0xbb   :  { %v41_v11 = vadd.f32 %v40_v10, %v39_v9 }
  0xbd   :  { %v42_v12 = vrot.slane %v41_v11, 2 }
  0xbf   :  { %v43_v13 = vadd.f32 %v42_v12, %v41_v11 }
  0xc1   :  { %v44_v14 = vrot.slane %v43_v13, 1 }
  0xc3   :  { %v45_v15 = vadd.f32 %v44_v14, %v43_v13 }
  0xc5   :  { %77 = vpush %v45_v15 }
  0xf6   :  { %s78_s11 = spop %77 }
  0xf7   :  { %48 = sst [smem:[#allocation6]] %s78_s11 }
  0xf8   :  { %137 = shalt.err (!%p134_p4)
}
  0xf9   :  { %s146_s18 = smov [#allocation6]  }
  0xfa   :  { %56 = dma.smem_to_hbm %s146_s18, 16, %s208_s2, [#allocation5]  }
  0xfb   :  { %140 = dma.done.wait [#allocation5], 16  }
  0xfc   :  { %141 = vsyncadd [#allocation5], 4294967280 }
  0xfd   :  { %142 = dma.done.wait [#allocation4], 16  }
  0xfe   :  { %143 = vsyncadd [#allocation4], 4294967280 }
  0xff   :  { %73 = sfence }
 0x100   :  { %74 = vsyncpa [#allocation3], 1 }
 0x101   :  { %75 = vsyncpa [#allocation4], 1 }
 0x102   :  { %76 = vsyncpa [#allocation5], 1 }

</bundles_post_ra>
